<compile_context>
chip_gen: v6e
topology: v6e:2x2x1
jax: 0.10.0
libtpu: 0.0.40
codegen_flags: <defaults>
</compile_context>

<pallas_src>
import functools

import jax
import jax.numpy as jnp
from jax.experimental import pallas as pl
from jax.experimental.pallas import tpu as pltpu


def _adaptive_windows(in_size: int, out_size: int):
    """Static PyTorch AdaptiveMaxPool window boundaries: [start, end) per output idx."""
    wins = []
    for i in range(out_size):
        start = (i * in_size) // out_size
        end = -(-((i + 1) * in_size) // out_size)  # ceil div
        wins.append((start, end))
    return wins


def _gmp_kernel(x_ref, o_ref, *, h_wins, w_wins, w_in):
    # x_ref: (T, H_in*W_in)  -- T independent (n, c) planes, spatial on lanes.
    # o_ref: (T, H_out*W_out) -- pooled planes in the same compute layout.
    #
    # Window boundaries are static (derived from shapes), so these Python loops
    # unroll at trace time. Per output row: elementwise (VPU) maxima over the
    # H-window lane slices, then exactly one cross-lane reduce per output
    # element. The pooled block is assembled in registers and stored once.
    rows = []
    for hs, he in h_wins:
        band = x_ref[:, hs * w_in:(hs + 1) * w_in]
        for r in range(hs + 1, he):
            band = jnp.maximum(band, x_ref[:, r * w_in:(r + 1) * w_in])
        cols = [jnp.max(band[:, ws:we], axis=-1, keepdims=True) for ws, we in w_wins]
        rows.append(jnp.concatenate(cols, axis=-1) if len(cols) > 1 else cols[0])
    pooled = jnp.concatenate(rows, axis=-1) if len(rows) > 1 else rows[0]
    o_ref[...] = pooled.astype(o_ref.dtype)


def _tpu_info():
    """Best-effort TensorCore count / physical VMEM query with safe fallbacks."""
    vmem_cap = 64 * 1024 * 1024  # conservative default (v7x per-core VMEM)
    num_cores = 1
    try:
        info = pltpu.get_tpu_info()
        for attr in ("vmem_capacity_bytes", "vmem_bytes", "vmem_size_bytes"):
            v = getattr(info, attr, None)
            if v:
                vmem_cap = int(v)
                break
        for attr in ("num_cores", "core_count", "num_tensorcores"):
            v = getattr(info, attr, None)
            if v:
                num_cores = int(v)
                break
    except Exception:
        pass
    return vmem_cap, num_cores


def _pick_tile(nc, l_in, p_out, itemsize, *, target_in_bytes, min_in_bytes, num_cores):
    """Pick T (rows per block) using *padded* VMEM accounting.

    Returns (T, padded_input_block_bytes, padded_output_block_bytes).
    T is a divisor of nc that is a multiple of the sublane packing (or nc itself).
    """
    sub = max(8, 32 // itemsize)  # sublane packing: 8 (f32) / 16 (bf16) / 32 (int8)

    def rup(x, m):
        return -(-x // m) * m

    def in_bytes(t):
        return rup(t, sub) * rup(l_in, 128) * itemsize

    def out_bytes(t):
        return rup(t, sub) * rup(p_out, 128) * itemsize

    cands = sorted({d for d in range(sub, nc + 1, sub) if nc % d == 0} | {nc})

    # Largest candidate whose padded input block fits the per-buffer target.
    fitting = [d for d in cands if in_bytes(d) <= target_in_bytes]
    t = max(fitting) if fitting else min(cands)

    # Megacore (v7x): prefer a grid-step count that is a multiple of the core
    # count, but never shrink the block below min_in_bytes. Single-core chips
    # (num_cores == 1) never shrink.
    if num_cores > 1:
        for d in sorted(cands, reverse=True):
            if d > t:
                continue
            g = nc // d
            if g >= num_cores and g % num_cores == 0 and in_bytes(d) >= min_in_bytes:
                t = d
                break

    return t, in_bytes(t), out_bytes(t)


def gmp_forward(x_nchw: jax.Array, H: int, W: int) -> jax.Array:
    """AdaptiveMaxPool2d((H, W)) + permute(0, 2, 3, 1). Input NCHW, output NHWC."""
    N, C, H_in, W_in = x_nchw.shape
    h_wins = _adaptive_windows(H_in, H)
    w_wins = _adaptive_windows(W_in, W)

    nc = N * C
    l_in = H_in * W_in
    p_out = H * W
    itemsize = jnp.dtype(x_nchw.dtype).itemsize

    vmem_cap, num_cores = _tpu_info()
    t, in_blk_bytes, out_blk_bytes = _pick_tile(
        nc, l_in, p_out, itemsize,
        target_in_bytes=8 * 1024 * 1024,   # ~8 MiB padded per input buffer
        min_in_bytes=512 * 1024,           # never shred below this for megacore
        num_cores=num_cores,
    )

    # VMEM budget: double-buffered input + output blocks + compiler headroom.
    needed = 2 * (in_blk_bytes + out_blk_bytes) + 4 * 1024 * 1024
    vmem_limit = max(32 * 1024 * 1024, needed)
    vmem_limit = min(vmem_limit, int(vmem_cap * 0.95))
    # TODO(synk): if even the minimal (T=sublane) block exceeds physical VMEM
    # (enormous spatial extents), add a spatial-axis tiling path with a
    # running-max VMEM accumulator instead of failing.

    grid = (nc // t,)
    x2 = x_nchw.reshape(nc, l_in)  # free, contiguous reshape

    kernel = functools.partial(_gmp_kernel, h_wins=h_wins, w_wins=w_wins, w_in=W_in)

    pooled = pl.pallas_call(
        kernel,
        out_shape=jax.ShapeDtypeStruct((nc, p_out), x_nchw.dtype),
        grid_spec=pl.GridSpec(
            grid=grid,
            in_specs=[pl.BlockSpec((t, l_in), lambda i: (i, 0))],
            out_specs=pl.BlockSpec((t, p_out), lambda i: (i, 0)),
        ),
        compiler_params=pltpu.CompilerParams(
            dimension_semantics=("parallel",),
            vmem_limit_bytes=vmem_limit,
        ),
        cost_estimate=pl.CostEstimate(
            flops=nc * l_in,  # ~one compare per input element
            transcendentals=0,
            bytes_accessed=(nc * l_in + nc * p_out) * itemsize,
        ),
    )(x2)

    # The module's permute(0, 2, 3, 1) on the *pooled* tensor (kh*kw smaller
    # than the input), done in XLA where it is essentially free.
    return pooled.reshape(N, C, H, W).transpose(0, 2, 3, 1)


def _reference_gmp(x_nchw: jax.Array, H: int, W: int) -> jax.Array:
    """Plain-JAX reference for adaptive max pool + permute (sanity check)."""
    N, C, H_in, W_in = x_nchw.shape
    h_wins = _adaptive_windows(H_in, H)
    w_wins = _adaptive_windows(W_in, W)
    rows = []
    for hs, he in h_wins:
        cols = []
        for ws, we in w_wins:
            cols.append(jnp.max(x_nchw[:, :, hs:he, ws:we], axis=(2, 3)))  # (N, C)
        rows.append(jnp.stack(cols, axis=-1))  # (N, C, W)
    out_nchw = jnp.stack(rows, axis=-2)        # (N, C, H, W)
    return jnp.transpose(out_nchw, (0, 2, 3, 1))  # NHWC


if __name__ == "__main__":
    key = jax.random.PRNGKey(0)
    N, C, H_in, W_in = 2, 4, 16, 16
    H_out, W_out = 4, 4  # GMP(H=4, W=4)

    x = jax.random.normal(key, (N, C, H_in, W_in), dtype=jnp.float32)  # NCHW

    out = jax.block_until_ready(gmp_forward(x, H_out, W_out))
    ref = _reference_gmp(x, H_out, W_out)

    assert out.shape == (N, H_out, W_out, C), out.shape
    assert jnp.allclose(out, ref), "Pallas GMP output mismatch vs reference"

    print("KERNEL_OK")
</pallas_src>

<mosaic_0001>
module attributes {stable_mosaic.version = 11 : i64} {
  func.func @_gmp_kernel(%arg0: i32, %arg1: memref<8x256xf32, #tpu.memory_space<vmem>>, %arg2: memref<8x16xf32, #tpu.memory_space<vmem>>) attributes {dimension_semantics = [#tpu.dimension_semantics<parallel>], iteration_bounds = array<i64: 1>, scalar_prefetch = 0 : i64, scratch_operands = 0 : i64, tpu.core_type = #tpu.core_type<tc>, window_params = [{transform_indices = @transform_0, window_bounds = array<i64: 8, 256>}, {transform_indices = @transform_1, window_bounds = array<i64: 8, 16>}]} {
    %c0 = arith.constant 0 : index
    %c0_0 = arith.constant 0 : index
    %0 = vector.load %arg1[%c0, %c0_0] : memref<8x256xf32, #tpu.memory_space<vmem>>, vector<8x16xf32>
    %c0_1 = arith.constant 0 : index
    %c16 = arith.constant 16 : index
    %1 = vector.load %arg1[%c0_1, %c16] : memref<8x256xf32, #tpu.memory_space<vmem>>, vector<8x16xf32>
    %2 = arith.maximumf %0, %1 : vector<8x16xf32>
    %c0_2 = arith.constant 0 : index
    %c32 = arith.constant 32 : index
    %3 = vector.load %arg1[%c0_2, %c32] : memref<8x256xf32, #tpu.memory_space<vmem>>, vector<8x16xf32>
    %4 = arith.maximumf %2, %3 : vector<8x16xf32>
    %c0_3 = arith.constant 0 : index
    %c48 = arith.constant 48 : index
    %5 = vector.load %arg1[%c0_3, %c48] : memref<8x256xf32, #tpu.memory_space<vmem>>, vector<8x16xf32>
    %6 = arith.maximumf %4, %5 : vector<8x16xf32>
    %7 = vector.extract_strided_slice %6 {offsets = [0, 0], sizes = [8, 4], strides = [1, 1]} : vector<8x16xf32> to vector<8x4xf32>
    %cst = arith.constant dense<0xFF800000> : vector<8xf32>
    %8 = vector.multi_reduction <maximumf>, %7, %cst [1] : vector<8x4xf32> to vector<8xf32>
    %9 = vector.shape_cast %8 : vector<8xf32> to vector<8x1xf32>
    %10 = vector.extract_strided_slice %6 {offsets = [0, 4], sizes = [8, 4], strides = [1, 1]} : vector<8x16xf32> to vector<8x4xf32>
    %cst_4 = arith.constant dense<0xFF800000> : vector<8xf32>
    %11 = vector.multi_reduction <maximumf>, %10, %cst_4 [1] : vector<8x4xf32> to vector<8xf32>
    %12 = vector.shape_cast %11 : vector<8xf32> to vector<8x1xf32>
    %13 = vector.extract_strided_slice %6 {offsets = [0, 8], sizes = [8, 4], strides = [1, 1]} : vector<8x16xf32> to vector<8x4xf32>
    %cst_5 = arith.constant dense<0xFF800000> : vector<8xf32>
    %14 = vector.multi_reduction <maximumf>, %13, %cst_5 [1] : vector<8x4xf32> to vector<8xf32>
    %15 = vector.shape_cast %14 : vector<8xf32> to vector<8x1xf32>
    %16 = vector.extract_strided_slice %6 {offsets = [0, 12], sizes = [8, 4], strides = [1, 1]} : vector<8x16xf32> to vector<8x4xf32>
    %cst_6 = arith.constant dense<0xFF800000> : vector<8xf32>
    %17 = vector.multi_reduction <maximumf>, %16, %cst_6 [1] : vector<8x4xf32> to vector<8xf32>
    %18 = vector.shape_cast %17 : vector<8xf32> to vector<8x1xf32>
    %19 = tpu.concatenate %9, %12, %15, %18 in 1 : vector<8x1xf32>, vector<8x1xf32>, vector<8x1xf32>, vector<8x1xf32> -> vector<8x4xf32>
    %c0_7 = arith.constant 0 : index
    %c64 = arith.constant 64 : index
    %20 = vector.load %arg1[%c0_7, %c64] : memref<8x256xf32, #tpu.memory_space<vmem>>, vector<8x16xf32>
    %c0_8 = arith.constant 0 : index
    %c80 = arith.constant 80 : index
    %21 = vector.load %arg1[%c0_8, %c80] : memref<8x256xf32, #tpu.memory_space<vmem>>, vector<8x16xf32>
    %22 = arith.maximumf %20, %21 : vector<8x16xf32>
    %c0_9 = arith.constant 0 : index
    %c96 = arith.constant 96 : index
    %23 = vector.load %arg1[%c0_9, %c96] : memref<8x256xf32, #tpu.memory_space<vmem>>, vector<8x16xf32>
    %24 = arith.maximumf %22, %23 : vector<8x16xf32>
    %c0_10 = arith.constant 0 : index
    %c112 = arith.constant 112 : index
    %25 = vector.load %arg1[%c0_10, %c112] : memref<8x256xf32, #tpu.memory_space<vmem>>, vector<8x16xf32>
    %26 = arith.maximumf %24, %25 : vector<8x16xf32>
    %27 = vector.extract_strided_slice %26 {offsets = [0, 0], sizes = [8, 4], strides = [1, 1]} : vector<8x16xf32> to vector<8x4xf32>
    %cst_11 = arith.constant dense<0xFF800000> : vector<8xf32>
    %28 = vector.multi_reduction <maximumf>, %27, %cst_11 [1] : vector<8x4xf32> to vector<8xf32>
    %29 = vector.shape_cast %28 : vector<8xf32> to vector<8x1xf32>
    %30 = vector.extract_strided_slice %26 {offsets = [0, 4], sizes = [8, 4], strides = [1, 1]} : vector<8x16xf32> to vector<8x4xf32>
    %cst_12 = arith.constant dense<0xFF800000> : vector<8xf32>
    %31 = vector.multi_reduction <maximumf>, %30, %cst_12 [1] : vector<8x4xf32> to vector<8xf32>
    %32 = vector.shape_cast %31 : vector<8xf32> to vector<8x1xf32>
    %33 = vector.extract_strided_slice %26 {offsets = [0, 8], sizes = [8, 4], strides = [1, 1]} : vector<8x16xf32> to vector<8x4xf32>
    %cst_13 = arith.constant dense<0xFF800000> : vector<8xf32>
    %34 = vector.multi_reduction <maximumf>, %33, %cst_13 [1] : vector<8x4xf32> to vector<8xf32>
    %35 = vector.shape_cast %34 : vector<8xf32> to vector<8x1xf32>
    %36 = vector.extract_strided_slice %26 {offsets = [0, 12], sizes = [8, 4], strides = [1, 1]} : vector<8x16xf32> to vector<8x4xf32>
    %cst_14 = arith.constant dense<0xFF800000> : vector<8xf32>
    %37 = vector.multi_reduction <maximumf>, %36, %cst_14 [1] : vector<8x4xf32> to vector<8xf32>
    %38 = vector.shape_cast %37 : vector<8xf32> to vector<8x1xf32>
    %39 = tpu.concatenate %29, %32, %35, %38 in 1 : vector<8x1xf32>, vector<8x1xf32>, vector<8x1xf32>, vector<8x1xf32> -> vector<8x4xf32>
    %c0_15 = arith.constant 0 : index
    %c128 = arith.constant 128 : index
    %40 = vector.load %arg1[%c0_15, %c128] : memref<8x256xf32, #tpu.memory_space<vmem>>, vector<8x16xf32>
    %c0_16 = arith.constant 0 : index
    %c144 = arith.constant 144 : index
    %41 = vector.load %arg1[%c0_16, %c144] : memref<8x256xf32, #tpu.memory_space<vmem>>, vector<8x16xf32>
    %42 = arith.maximumf %40, %41 : vector<8x16xf32>
    %c0_17 = arith.constant 0 : index
    %c160 = arith.constant 160 : index
    %43 = vector.load %arg1[%c0_17, %c160] : memref<8x256xf32, #tpu.memory_space<vmem>>, vector<8x16xf32>
    %44 = arith.maximumf %42, %43 : vector<8x16xf32>
    %c0_18 = arith.constant 0 : index
    %c176 = arith.constant 176 : index
    %45 = vector.load %arg1[%c0_18, %c176] : memref<8x256xf32, #tpu.memory_space<vmem>>, vector<8x16xf32>
    %46 = arith.maximumf %44, %45 : vector<8x16xf32>
    %47 = vector.extract_strided_slice %46 {offsets = [0, 0], sizes = [8, 4], strides = [1, 1]} : vector<8x16xf32> to vector<8x4xf32>
    %cst_19 = arith.constant dense<0xFF800000> : vector<8xf32>
    %48 = vector.multi_reduction <maximumf>, %47, %cst_19 [1] : vector<8x4xf32> to vector<8xf32>
    %49 = vector.shape_cast %48 : vector<8xf32> to vector<8x1xf32>
    %50 = vector.extract_strided_slice %46 {offsets = [0, 4], sizes = [8, 4], strides = [1, 1]} : vector<8x16xf32> to vector<8x4xf32>
    %cst_20 = arith.constant dense<0xFF800000> : vector<8xf32>
    %51 = vector.multi_reduction <maximumf>, %50, %cst_20 [1] : vector<8x4xf32> to vector<8xf32>
    %52 = vector.shape_cast %51 : vector<8xf32> to vector<8x1xf32>
    %53 = vector.extract_strided_slice %46 {offsets = [0, 8], sizes = [8, 4], strides = [1, 1]} : vector<8x16xf32> to vector<8x4xf32>
    %cst_21 = arith.constant dense<0xFF800000> : vector<8xf32>
    %54 = vector.multi_reduction <maximumf>, %53, %cst_21 [1] : vector<8x4xf32> to vector<8xf32>
    %55 = vector.shape_cast %54 : vector<8xf32> to vector<8x1xf32>
    %56 = vector.extract_strided_slice %46 {offsets = [0, 12], sizes = [8, 4], strides = [1, 1]} : vector<8x16xf32> to vector<8x4xf32>
    %cst_22 = arith.constant dense<0xFF800000> : vector<8xf32>
    %57 = vector.multi_reduction <maximumf>, %56, %cst_22 [1] : vector<8x4xf32> to vector<8xf32>
    %58 = vector.shape_cast %57 : vector<8xf32> to vector<8x1xf32>
    %59 = tpu.concatenate %49, %52, %55, %58 in 1 : vector<8x1xf32>, vector<8x1xf32>, vector<8x1xf32>, vector<8x1xf32> -> vector<8x4xf32>
    %c0_23 = arith.constant 0 : index
    %c192 = arith.constant 192 : index
    %60 = vector.load %arg1[%c0_23, %c192] : memref<8x256xf32, #tpu.memory_space<vmem>>, vector<8x16xf32>
    %c0_24 = arith.constant 0 : index
    %c208 = arith.constant 208 : index
    %61 = vector.load %arg1[%c0_24, %c208] : memref<8x256xf32, #tpu.memory_space<vmem>>, vector<8x16xf32>
    %62 = arith.maximumf %60, %61 : vector<8x16xf32>
    %c0_25 = arith.constant 0 : index
    %c224 = arith.constant 224 : index
    %63 = vector.load %arg1[%c0_25, %c224] : memref<8x256xf32, #tpu.memory_space<vmem>>, vector<8x16xf32>
    %64 = arith.maximumf %62, %63 : vector<8x16xf32>
    %c0_26 = arith.constant 0 : index
    %c240 = arith.constant 240 : index
    %65 = vector.load %arg1[%c0_26, %c240] : memref<8x256xf32, #tpu.memory_space<vmem>>, vector<8x16xf32>
    %66 = arith.maximumf %64, %65 : vector<8x16xf32>
    %67 = vector.extract_strided_slice %66 {offsets = [0, 0], sizes = [8, 4], strides = [1, 1]} : vector<8x16xf32> to vector<8x4xf32>
    %cst_27 = arith.constant dense<0xFF800000> : vector<8xf32>
    %68 = vector.multi_reduction <maximumf>, %67, %cst_27 [1] : vector<8x4xf32> to vector<8xf32>
    %69 = vector.shape_cast %68 : vector<8xf32> to vector<8x1xf32>
    %70 = vector.extract_strided_slice %66 {offsets = [0, 4], sizes = [8, 4], strides = [1, 1]} : vector<8x16xf32> to vector<8x4xf32>
    %cst_28 = arith.constant dense<0xFF800000> : vector<8xf32>
    %71 = vector.multi_reduction <maximumf>, %70, %cst_28 [1] : vector<8x4xf32> to vector<8xf32>
    %72 = vector.shape_cast %71 : vector<8xf32> to vector<8x1xf32>
    %73 = vector.extract_strided_slice %66 {offsets = [0, 8], sizes = [8, 4], strides = [1, 1]} : vector<8x16xf32> to vector<8x4xf32>
    %cst_29 = arith.constant dense<0xFF800000> : vector<8xf32>
    %74 = vector.multi_reduction <maximumf>, %73, %cst_29 [1] : vector<8x4xf32> to vector<8xf32>
    %75 = vector.shape_cast %74 : vector<8xf32> to vector<8x1xf32>
    %76 = vector.extract_strided_slice %66 {offsets = [0, 12], sizes = [8, 4], strides = [1, 1]} : vector<8x16xf32> to vector<8x4xf32>
    %cst_30 = arith.constant dense<0xFF800000> : vector<8xf32>
    %77 = vector.multi_reduction <maximumf>, %76, %cst_30 [1] : vector<8x4xf32> to vector<8xf32>
    %78 = vector.shape_cast %77 : vector<8xf32> to vector<8x1xf32>
    %79 = tpu.concatenate %69, %72, %75, %78 in 1 : vector<8x1xf32>, vector<8x1xf32>, vector<8x1xf32>, vector<8x1xf32> -> vector<8x4xf32>
    %80 = tpu.concatenate %19, %39, %59, %79 in 1 : vector<8x4xf32>, vector<8x4xf32>, vector<8x4xf32>, vector<8x4xf32> -> vector<8x16xf32>
    %c0_31 = arith.constant 0 : index
    %c0_32 = arith.constant 0 : index
    %81 = vector.load %arg2[%c0_31, %c0_32] : memref<8x16xf32, #tpu.memory_space<vmem>>, vector<8x16xf32>
    tpu.vector_store %arg2[%c0_31, %c0_32], %80 {strides = array<i32>} : memref<8x16xf32, #tpu.memory_space<vmem>>, vector<8x16xf32>,
    return
  }
  func.func @transform_0(%arg0: i32) -> (i32, i32) {
    %c0_i32 = arith.constant 0 : i32
    %c0_i32_0 = arith.constant 0 : i32
    return %arg0, %c0_i32 : i32, i32
  }
  func.func @transform_1(%arg0: i32) -> (i32, i32) {
    %c0_i32 = arith.constant 0 : i32
    %c0_i32_0 = arith.constant 0 : i32
    return %arg0, %c0_i32 : i32, i32
  }
}

</mosaic_0001>

<bundles_post_ra>
// kernel: tpu_custom_call.1
= control target key start
LH: loop header
LB: loop body
LE: loop exit
PB: predicated region body
PF: predicated region fallthrough
CT: control target
= control target key end

     0   :  { %6 = vsyncpa [#allocation3], 0  ;;  %s255_s0 = inlined_call_operand.hbm [shape: f32[8,256], index: 0, kind: input, shape index: {}]   ;;  %s256_s1 = inlined_call_operand.hbm [shape: f32[8,16], index: 1, kind: output, shape index: {}]  }
   0x1   :  { %7 = vsyncpa [#allocation4], 0  ;;  %s206_s6 = smov [#allocation2]  }
   0x2   :  { %s14_s7 = sshll.u32 %s206_s6, 4  ;;  %s15_s7 = int_to_ptr.vmem [resolvable:$true] %s14_s7 }
   0x3   :  { %s170_s8 = scalar_lea.vmem %s15_s7, 256  ;;  %p175_p1 = scmp.lt.s32.totalorder %s15_s7, %s15_s7 }
   0x4   :  { %p171_p0 = scmp.ne.s32.totalorder %s15_s7, %s170_s8  ;;  %p176_p2 = scmp.lt.s32.totalorder %s170_s8, %s170_s8 }
   0x6   :  { %p177_p3 = por %p176_p2, %p175_p1 }
   0x8   :  { %p178_p4 = pnand %p177_p3, %p171_p0 }
   0xa   :  { %181 = shalt.err (!%p178_p4)
}
   0xb   :  { %17 = dma.hbm_to_vmem [thread:$0]  %s255_s0, 256, %s15_s7, [#allocation3]  }
   0xc   :  { %202 = dma.done.wait [#allocation3], 256  }
   0xd   :  { %203 = vsyncadd [#allocation3], 4294967040  ;;  %v21_v0 = vld [vmem:[#allocation2] sm:$0xff]  ;;  %s207_s11 = smov 96   ;;  %s208_s12 = smov 112   ;;  %v76_v1 = vld [vmem:[#allocation2 + $0x8] sm:$0xff] }
   0xe   :  { %27 = vrot.lane.b32.xlu1 %v21_v0, %s207_s11  ;;  %23 = vrot.lane.b32.xlu0 %v21_v0, %s208_s12  ;;  %s209_s13 = smov 80   ;;  %vm61_vm0 = vcmask 589344   ;;  %vm57_vm1 = vcmask 556544   ;;  %vm39_vm2 = vcmask 64544   ;;  %vm65_vm3 = vcmask 622144   ;;  %s210_s0 = smov 4  }
   0xf   :  { %vm43_vm4 = vcmask 97344   ;;  %vm35_vm5 = vcmask 31744   ;;  %vm69_vm6 = vcmask 654944   ;;  %vm47_vm7 = vcmask 130144   ;;  %s211_s14 = smov 8   ;;  %s212_s15 = smov 12  }
  0x10   :  { %vm51_vm8 = vcmask 7168   ;;  %vm53_vm9 = vcmask 15360   ;;  %vm55_vm10 = vcmask 23552   ;;  %vm133_vm11 = vcmask 64512   ;;  %s213_s16 = smov [#allocation5]  }
  0x11   :  { %s145_s17 = sshll.u32 %s213_s16, 4  ;;  %vm135_vm12 = vcmask 97280   ;;  %vm137_vm13 = vcmask 130048   ;;  %s146_s17 = int_to_ptr.vmem [resolvable:$true] %s145_s17 }
  0x12   :  { %82 = vrot.lane.b32.xlu1 %v76_v1, %s207_s11  ;;  %78 = vrot.lane.b32.xlu0 %v76_v1, %s208_s12  ;;  %s182_s18 = scalar_lea.vmem %s146_s17, 128  ;;  %p187_p6 = scmp.lt.s32.totalorder %s146_s17, %s146_s17 }
  0x13   :  { %p183_p5 = scmp.ne.s32.totalorder %s146_s17, %s182_s18  ;;  %p188_p7 = scmp.lt.s32.totalorder %s182_s18, %s182_s18 }
  0x15   :  { %p189_p8 = por %p188_p7, %p187_p6 }
  0x16   :  { %86 = vrot.lane.b32.xlu1 %v76_v1, %s209_s13  ;;  %31 = vrot.lane.b32.xlu0 %v21_v0, %s209_s13 }
  0x17   :  { %p190_p9 = pnand %p189_p8, %p183_p5 }
  0x80   :  { %v28_v2 = vpop.permute.xlu1 %27  ;;  %v24_v3 = vpop.permute.xlu0 %23 }
  0x81   :  { %v26_v4 = vmax.f32 %v21_v0, %v24_v3 }
  0x83   :  { %v30_v9 = vmax.f32 %v26_v4, %v28_v2 }
  0x84   :  { %v83_v5 = vpop.permute.xlu1 %82  ;;  %v79_v6 = vpop.permute.xlu0 %78 }
  0x85   :  { %v81_v7 = vmax.f32 %v76_v1, %v79_v6 }
  0x87   :  { %v85_v8 = vmax.f32 %v81_v7, %v83_v5 }
  0x88   :  { %v87_v10 = vpop.permute.xlu1 %86  ;;  %v32_v11 = vpop.permute.xlu0 %31 }
  0x89   :  { %v34_v12 = vmax.f32 %v30_v9, %v32_v11  ;;  %v89_v13 = vmax.f32 %v85_v8, %v87_v10 }
  0x8b   :  { %v62_v14 = vsel %vm61_vm0, %v34_v12, -inf  ;;  %v58_v15 = vsel %vm57_vm1, %v34_v12, -inf  ;;  %v93_v16 = vsel %vm39_vm2, %v89_v13, -inf  ;;  %v66_v17 = vsel %vm65_vm3, %v34_v12, -inf }
  0x8c   :  { %63 = vmax.xlane.f32.xlu1 %v62_v14  ;;  %59 = vmax.xlane.f32.xlu0 %v58_v15  ;;  %v96_v18 = vsel %vm43_vm4, %v89_v13, -inf  ;;  %v90_v19 = vsel %vm35_vm5, %v89_v13, -inf  ;;  %v108_v20 = vsel %vm61_vm0, %v89_v13, -inf  ;;  %v70_v21 = vsel %vm69_vm6, %v34_v12, -inf }
  0x8d   :  { %v111_v22 = vsel %vm65_vm3, %v89_v13, -inf  ;;  %v105_v23 = vsel %vm57_vm1, %v89_v13, -inf  ;;  %v99_v24 = vsel %vm47_vm7, %v89_v13, -inf  ;;  %v36_v25 = vsel %vm35_vm5, %v34_v12, -inf }
  0x8e   :  { %v114_v26 = vsel %vm69_vm6, %v89_v13, -inf  ;;  %v44_v27 = vsel %vm43_vm4, %v34_v12, -inf  ;;  %v40_v28 = vsel %vm39_vm2, %v34_v12, -inf  ;;  %v48_v29 = vsel %vm47_vm7, %v34_v12, -inf }
  0x90   :  { %94 = vmax.xlane.f32.xlu1 %v93_v16  ;;  %67 = vmax.xlane.f32.xlu0 %v66_v17 }
  0x94   :  { %97 = vmax.xlane.f32.xlu1 %v96_v18  ;;  %91 = vmax.xlane.f32.xlu0 %v90_v19 }
  0x98   :  { %109 = vmax.xlane.f32.xlu1 %v108_v20  ;;  %71 = vmax.xlane.f32.xlu0 %v70_v21 }
  0x9c   :  { %112 = vmax.xlane.f32.xlu1 %v111_v22  ;;  %106 = vmax.xlane.f32.xlu0 %v105_v23 }
  0xa0   :  { %100 = vmax.xlane.f32.xlu0 %v99_v24  ;;  %37 = vmax.xlane.f32.xlu1 %v36_v25 }
  0xa4   :  { %115 = vmax.xlane.f32.xlu0 %v114_v26  ;;  %45 = vmax.xlane.f32.xlu1 %v44_v27 }
  0xa8   :  { %41 = vmax.xlane.f32.xlu0 %v40_v28 }
  0xac   :  { %49 = vmax.xlane.f32.xlu0 %v48_v29 }
 0x115   :  { %v64_v30 = vpop.xlane.xlu1 %63  ;;  %v60_v31 = vpop.xlane.xlu0 %59 }
 0x116   :  { %v73_v36 = vsel %vm51_vm8, %v60_v31, %v64_v30 }
 0x119   :  { %v95_v32 = vpop.xlane.xlu1 %94  ;;  %v68_v33 = vpop.xlane.xlu0 %67 }
 0x11a   :  { %v74_v37 = vsel %vm53_vm9, %v73_v36, %v68_v33 }
 0x11d   :  { %v98_v34 = vpop.xlane.xlu1 %97  ;;  %v92_v35 = vpop.xlane.xlu0 %91 }
 0x11e   :  { %v102_v42 = vsel %vm51_vm8, %v92_v35, %v95_v32 }
 0x11f   :  { %v103_v45 = vsel %vm53_vm9, %v102_v42, %v98_v34 }
 0x121   :  { %v110_v38 = vpop.xlane.xlu1 %109  ;;  %v72_v39 = vpop.xlane.xlu0 %71 }
 0x122   :  { %v75_v40 = vsel %vm55_vm10, %v74_v37, %v72_v39 }
 0x123   :  { %121 = vrot.lane.b32.xlu1 %v75_v40, %s210_s0 }
 0x125   :  { %v107_v41 = vpop.xlane.xlu0 %106  ;;  %v113_v43 = vpop.xlane.xlu1 %112 }
 0x126   :  { %v117_v46 = vsel %vm51_vm8, %v107_v41, %v110_v38 }
 0x127   :  { %v118_v50 = vsel %vm53_vm9, %v117_v46, %v113_v43 }
 0x129   :  { %v101_v44 = vpop.xlane.xlu0 %100  ;;  %v38_v48 = vpop.xlane.xlu1 %37 }
 0x12a   :  { %v104_v47 = vsel %vm55_vm10, %v103_v45, %v101_v44 }
 0x12b   :  { %125 = vrot.lane.b32.xlu0 %v104_v47, %s211_s14 }
 0x12d   :  { %v116_v49 = vpop.xlane.xlu0 %115  ;;  %v46_v53 = vpop.xlane.xlu1 %45 }
 0x12e   :  { %v119_v51 = vsel %vm55_vm10, %v118_v50, %v116_v49 }
 0x12f   :  { %129 = vrot.lane.b32.xlu1 %v119_v51, %s212_s15 }
 0x131   :  { %v42_v52 = vpop.xlane.xlu0 %41 }
 0x132   :  { %v52_v54 = vsel %vm51_vm8, %v38_v48, %v42_v52 }
 0x133   :  { %v54_v55 = vsel %vm53_vm9, %v52_v54, %v46_v53 }
 0x135   :  { %v50_v56 = vpop.xlane.xlu0 %49 }
 0x136   :  { %v56_v57 = vsel %vm55_vm10, %v54_v55, %v50_v56 }
 0x195   :  { %v122_v58 = vpop.permute.xlu1 %121 }
 0x196   :  { %v132_v60 = vsel %vm35_vm5, %v56_v57, %v122_v58 }
 0x19d   :  { %v126_v59 = vpop.permute.xlu0 %125 }
 0x19e   :  { %v134_v61 = vsel %vm133_vm11, %v132_v60, %v126_v59 }
 0x1a1   :  { %v130_v62 = vpop.permute.xlu1 %129 }
 0x1a2   :  { %v136_v63 = vsel %vm135_vm12, %v134_v61, %v130_v62 }
 0x1a3   :  { %138 = vst.msk [vmem:[#allocation5] sm:$0xff] %vm137_vm13, %v136_v63 }
 0x1a4   :  { %193 = shalt.err (!%p190_p9)
}
 0x1a5   :  { %148 = dma.vmem_to_hbm [thread:$0]  %s146_s17, 128, %s256_s1, [#allocation4]  }
 0x1a6   :  { %204 = dma.done.wait [#allocation4], 128  }
 0x1a7   :  { %205 = vsyncadd [#allocation4], 4294967168 }
 0x1a8   :  { %152 = vsyncpa [#allocation3], 1 }
 0x1a9   :  { %153 = vsyncpa [#allocation4], 1 }

</bundles_post_ra>
